<compile_context>
chip_gen: v7x
topology: tpu7x:2x2x1
jax: 0.10.0
libtpu: 0.0.40
codegen_flags: <defaults>
</compile_context>

<pallas_src>
import jax
import jax.numpy as jnp
from jax.experimental import pallas as pl
from jax.experimental.pallas import tpu as pltpu


def _cdiv(a, b):
    return (a + b - 1) // b


def _round_up(n, m):
    return _cdiv(n, m) * m


def _mlp_kernel(xT_ref, w1_ref, b1_ref, w2_ref, b2_ref, w3_ref, b3_ref, oT_ref):
    # xT_ref: (8, TB) f32, feature-major (rows 4..7 are zero padding).
    # Weights bf16 ([out, in], K/out padded to 8 where needed), biases f32 ([out, 1]).
    x16 = xT_ref[...].astype(jnp.bfloat16)                 # (8, TB) bf16, single small cast

    # ---- Layer 1: Linear(4 -> 64) + ReLU ----  (MXU, K padded 4 -> 8)
    h1 = jnp.dot(w1_ref[...], x16,
                 preferred_element_type=jnp.float32) + b1_ref[...]
    h1 = jnp.maximum(h1, 0.0).astype(jnp.bfloat16)         # (64, TB)

    # Dropout(0.2): identity at inference.

    # ---- Layer 2: Linear(64 -> 64) + ReLU ----  (bf16 MXU, f32 accumulate)
    h2 = jnp.dot(w2_ref[...], h1,
                 preferred_element_type=jnp.float32) + b2_ref[...]
    h2 = jnp.maximum(h2, 0.0).astype(jnp.bfloat16)         # (64, TB)

    # ---- Layer 3: Linear(64 -> 5, padded to 8 rows) + Sigmoid ----
    logits = jnp.dot(w3_ref[...], h2,
                     preferred_element_type=jnp.float32) + b3_ref[...]
    oT_ref[...] = jax.nn.sigmoid(logits)                   # (8, TB) f32, unmasked stores


def pet_matching_forward(x, params, *, batch_tile=8192):
    """x: [B, 4] float32 -> [B, 5] float32.

    params are PyTorch-layout f32: (w1[64,4], b1[64], w2[64,64], b2[64], w3[5,64], b3[5]).
    """
    w1, b1, w2, b2, w3, b3 = params
    B, F = x.shape
    assert F == 4

    # --- Kernel-ready weights (tiny; fuses into the jitted wrapper) ---
    w1k = jnp.zeros((64, 8), jnp.bfloat16).at[:, :4].set(w1.astype(jnp.bfloat16))
    w2k = w2.astype(jnp.bfloat16)
    w3k = jnp.zeros((8, 64), jnp.bfloat16).at[:5, :].set(w3.astype(jnp.bfloat16))
    b1k = b1.reshape(64, 1).astype(jnp.float32)
    b2k = b2.reshape(64, 1).astype(jnp.float32)
    b3k = jnp.zeros((8, 1), jnp.float32).at[:5, 0].set(b3.astype(jnp.float32))

    # --- Tiling: batch lane-dense; <128 padded columns per tile; >=2 tiles when
    # B > 128 so both v7x TensorCores get work. ---
    B128 = _round_up(B, 128)
    n_tiles = max(1, _cdiv(B128, batch_tile))
    if B128 > 128:
        n_tiles = max(n_tiles, 2)
    tb = _round_up(_cdiv(B128, n_tiles), 128)
    B_pad = n_tiles * tb

    # Feature-major layout: pad batch -> B_pad, features 4 -> 8, then transpose.
    # Single pad + transpose expression so XLA fuses the layout work.
    xT = jnp.pad(x, ((0, B_pad - B), (0, 8 - F))).T        # (8, B_pad) f32

    def whole(arr):
        return pl.BlockSpec(arr.shape, lambda i, n=arr.ndim: (0,) * n)

    # Only set an explicit VMEM limit if someone pushes the tile very large
    # (keeps the default config safe on v7x's 64 MiB / 32 MiB-scoped VMEM).
    vmem_limit = 48 * 1024 * 1024 if tb > 16384 else None

    outT = pl.pallas_call(
        _mlp_kernel,
        out_shape=jax.ShapeDtypeStruct((8, B_pad), jnp.float32),
        grid_spec=pltpu.PrefetchScalarGridSpec(
            num_scalar_prefetch=0,
            grid=(n_tiles,),
            in_specs=[
                pl.BlockSpec((8, tb), lambda i: (0, i)),   # x tile (lane-dense in batch)
                whole(w1k), whole(b1k),
                whole(w2k), whole(b2k),
                whole(w3k), whole(b3k),
            ],
            out_specs=pl.BlockSpec((8, tb), lambda i: (0, i)),
        ),
        compiler_params=pltpu.CompilerParams(
            dimension_semantics=("parallel",),
            vmem_limit_bytes=vmem_limit,
        ),
    )(xT, w1k, b1k, w2k, b2k, w3k, b3k)

    return outT[:5, :B].T


def init_params(key):
    """PyTorch-default Linear init: uniform(-1/sqrt(fan_in), 1/sqrt(fan_in)),
    weights [out, in], biases [out], all f32 (kernel quantizes weights to bf16)."""
    def linear(key, fan_in, fan_out):
        kw, kb = jax.random.split(key)
        bound = 1.0 / (fan_in ** 0.5)
        w = jax.random.uniform(kw, (fan_out, fan_in), jnp.float32, -bound, bound)
        b = jax.random.uniform(kb, (fan_out,), jnp.float32, -bound, bound)
        return w, b

    k1, k2, k3 = jax.random.split(key, 3)
    w1, b1 = linear(k1, 4, 64)
    w2, b2 = linear(k2, 64, 64)
    w3, b3 = linear(k3, 64, 5)
    return (w1, b1, w2, b2, w3, b3)


def _reference(x, params):
    # Pure-JAX reference: weights rounded to bf16 (matching the kernel), math in f32.
    w1, b1, w2, b2, w3, b3 = params
    q = lambda w: w.astype(jnp.bfloat16).astype(jnp.float32)
    h1 = jnp.maximum(x @ q(w1).T + b1, 0.0)
    h2 = jnp.maximum(h1 @ q(w2).T + b2, 0.0)
    return jax.nn.sigmoid(h2 @ q(w3).T + b3)


if __name__ == "__main__":
    key = jax.random.PRNGKey(0)
    k_params, k_x = jax.random.split(key)

    params = init_params(k_params)
    x = jax.random.normal(k_x, (8, 4), jnp.float32)   # batch=8, features=4

    fwd = jax.jit(pet_matching_forward)
    out = jax.block_until_ready(fwd(x, params))

    ref = _reference(x, params)
    assert out.shape == (8, 5)
    # bf16 MXU operands / bf16 intermediate activations -> looser tolerance.
    assert jnp.allclose(out, ref, atol=2e-2, rtol=2e-2), "mismatch vs reference"

    print("KERNEL_OK")
</pallas_src>

<mosaic_0001>
module attributes {stable_mosaic.version = 11 : i64} {
  func.func @_mlp_kernel(%arg0: i32, %arg1: memref<8x128xf32, #tpu.memory_space<vmem>>, %arg2: memref<64x8xbf16, #tpu.memory_space<vmem>>, %arg3: memref<64x1xf32, #tpu.memory_space<vmem>>, %arg4: memref<64x64xbf16, #tpu.memory_space<vmem>>, %arg5: memref<64x1xf32, #tpu.memory_space<vmem>>, %arg6: memref<8x64xbf16, #tpu.memory_space<vmem>>, %arg7: memref<8x1xf32, #tpu.memory_space<vmem>>, %arg8: memref<8x128xf32, #tpu.memory_space<vmem>>) attributes {dimension_semantics = [#tpu.dimension_semantics<parallel>], iteration_bounds = array<i64: 1>, scalar_prefetch = 0 : i64, scratch_operands = 0 : i64, tpu.core_type = #tpu.core_type<tc>, window_params = [{transform_indices = @transform_0, window_bounds = array<i64: 8, 128>}, {pipeline_mode = #tpu.pipeline_mode<synchronous>, transform_indices = @transform_1, window_bounds = array<i64: 64, 8>}, {pipeline_mode = #tpu.pipeline_mode<synchronous>, transform_indices = @transform_2, window_bounds = array<i64: 64, 1>}, {pipeline_mode = #tpu.pipeline_mode<synchronous>, transform_indices = @transform_3, window_bounds = array<i64: 64, 64>}, {pipeline_mode = #tpu.pipeline_mode<synchronous>, transform_indices = @transform_4, window_bounds = array<i64: 64, 1>}, {pipeline_mode = #tpu.pipeline_mode<synchronous>, transform_indices = @transform_5, window_bounds = array<i64: 8, 64>}, {pipeline_mode = #tpu.pipeline_mode<synchronous>, transform_indices = @transform_6, window_bounds = array<i64: 8, 1>}, {transform_indices = @transform_7, window_bounds = array<i64: 8, 128>}]} {
    %c0 = arith.constant 0 : index
    %c0_0 = arith.constant 0 : index
    %0 = vector.load %arg1[%c0, %c0_0] : memref<8x128xf32, #tpu.memory_space<vmem>>, vector<8x128xf32>
    %1 = arith.truncf %0 : vector<8x128xf32> to vector<8x128xbf16>
    %c0_1 = arith.constant 0 : index
    %c0_2 = arith.constant 0 : index
    %2 = vector.load %arg2[%c0_1, %c0_2] : memref<64x8xbf16, #tpu.memory_space<vmem>>, vector<64x8xbf16>
    %cst = arith.constant dense<0.000000e+00> : vector<64x128xf32>
    %3 = tpu.matmul %2, %1, %cst {dimension_numbers = #tpu.dot_dimension_numbers<[1], [0], [0], [1], [0, 0, 1, 1], [], []>} : vector<64x8xbf16>, vector<8x128xbf16>, vector<64x128xf32> -> vector<64x128xf32>
    %c0_3 = arith.constant 0 : index
    %c0_4 = arith.constant 0 : index
    %4 = vector.load %arg3[%c0_3, %c0_4] : memref<64x1xf32, #tpu.memory_space<vmem>>, vector<64x1xf32>
    %5 = vector.broadcast %4 : vector<64x1xf32> to vector<64x128xf32>
    %6 = arith.addf %3, %5 : vector<64x128xf32>
    %cst_5 = arith.constant 0.000000e+00 : f32
    %7 = vector.broadcast %cst_5 : f32 to vector<64x128xf32>
    %8 = arith.maximumf %6, %7 : vector<64x128xf32>
    %9 = arith.truncf %8 : vector<64x128xf32> to vector<64x128xbf16>
    %c0_6 = arith.constant 0 : index
    %c0_7 = arith.constant 0 : index
    %10 = vector.load %arg4[%c0_6, %c0_7] : memref<64x64xbf16, #tpu.memory_space<vmem>>, vector<64x64xbf16>
    %cst_8 = arith.constant dense<0.000000e+00> : vector<64x128xf32>
    %11 = tpu.matmul %10, %9, %cst_8 {dimension_numbers = #tpu.dot_dimension_numbers<[1], [0], [0], [1], [0, 0, 1, 1], [], []>} : vector<64x64xbf16>, vector<64x128xbf16>, vector<64x128xf32> -> vector<64x128xf32>
    %c0_9 = arith.constant 0 : index
    %c0_10 = arith.constant 0 : index
    %12 = vector.load %arg5[%c0_9, %c0_10] : memref<64x1xf32, #tpu.memory_space<vmem>>, vector<64x1xf32>
    %13 = vector.broadcast %12 : vector<64x1xf32> to vector<64x128xf32>
    %14 = arith.addf %11, %13 : vector<64x128xf32>
    %cst_11 = arith.constant 0.000000e+00 : f32
    %15 = vector.broadcast %cst_11 : f32 to vector<64x128xf32>
    %16 = arith.maximumf %14, %15 : vector<64x128xf32>
    %17 = arith.truncf %16 : vector<64x128xf32> to vector<64x128xbf16>
    %c0_12 = arith.constant 0 : index
    %c0_13 = arith.constant 0 : index
    %18 = vector.load %arg6[%c0_12, %c0_13] : memref<8x64xbf16, #tpu.memory_space<vmem>>, vector<8x64xbf16>
    %cst_14 = arith.constant dense<0.000000e+00> : vector<8x128xf32>
    %19 = tpu.matmul %18, %17, %cst_14 {dimension_numbers = #tpu.dot_dimension_numbers<[1], [0], [0], [1], [0, 0, 1, 1], [], []>} : vector<8x64xbf16>, vector<64x128xbf16>, vector<8x128xf32> -> vector<8x128xf32>
    %c0_15 = arith.constant 0 : index
    %c0_16 = arith.constant 0 : index
    %20 = vector.load %arg7[%c0_15, %c0_16] : memref<8x1xf32, #tpu.memory_space<vmem>>, vector<8x1xf32>
    %21 = vector.broadcast %20 : vector<8x1xf32> to vector<8x128xf32>
    %22 = arith.addf %19, %21 : vector<8x128xf32>
    %23 = arith.negf %22 : vector<8x128xf32>
    %24 = math.exp %23 : vector<8x128xf32>
    %cst_17 = arith.constant 1.000000e+00 : f32
    %25 = vector.broadcast %cst_17 : f32 to vector<8x128xf32>
    %26 = arith.addf %25, %24 : vector<8x128xf32>
    %27 = arith.divf %25, %26 : vector<8x128xf32>
    %c0_18 = arith.constant 0 : index
    %c0_19 = arith.constant 0 : index
    %28 = vector.load %arg8[%c0_18, %c0_19] : memref<8x128xf32, #tpu.memory_space<vmem>>, vector<8x128xf32>
    tpu.vector_store %arg8[%c0_18, %c0_19], %27 {strides = array<i32>} : memref<8x128xf32, #tpu.memory_space<vmem>>, vector<8x128xf32>,
    return
  }
  func.func @transform_0(%arg0: i32) -> (i32, i32) {
    %c0_i32 = arith.constant 0 : i32
    %c0_i32_0 = arith.constant 0 : i32
    return %c0_i32, %arg0 : i32, i32
  }
  func.func @transform_1(%arg0: i32) -> (i32, i32) {
    %c0_i32 = arith.constant 0 : i32
    %c0_i32_0 = arith.constant 0 : i32
    %c0_i32_1 = arith.constant 0 : i32
    return %c0_i32, %c0_i32_0 : i32, i32
  }
  func.func @transform_2(%arg0: i32) -> (i32, i32) {
    %c0_i32 = arith.constant 0 : i32
    %c0_i32_0 = arith.constant 0 : i32
    %c0_i32_1 = arith.constant 0 : i32
    return %c0_i32, %c0_i32_0 : i32, i32
  }
  func.func @transform_3(%arg0: i32) -> (i32, i32) {
    %c0_i32 = arith.constant 0 : i32
    %c0_i32_0 = arith.constant 0 : i32
    %c0_i32_1 = arith.constant 0 : i32
    return %c0_i32, %c0_i32_0 : i32, i32
  }
  func.func @transform_4(%arg0: i32) -> (i32, i32) {
    %c0_i32 = arith.constant 0 : i32
    %c0_i32_0 = arith.constant 0 : i32
    %c0_i32_1 = arith.constant 0 : i32
    return %c0_i32, %c0_i32_0 : i32, i32
  }
  func.func @transform_5(%arg0: i32) -> (i32, i32) {
    %c0_i32 = arith.constant 0 : i32
    %c0_i32_0 = arith.constant 0 : i32
    %c0_i32_1 = arith.constant 0 : i32
    return %c0_i32, %c0_i32_0 : i32, i32
  }
  func.func @transform_6(%arg0: i32) -> (i32, i32) {
    %c0_i32 = arith.constant 0 : i32
    %c0_i32_0 = arith.constant 0 : i32
    %c0_i32_1 = arith.constant 0 : i32
    return %c0_i32, %c0_i32_0 : i32, i32
  }
  func.func @transform_7(%arg0: i32) -> (i32, i32) {
    %c0_i32 = arith.constant 0 : i32
    %c0_i32_0 = arith.constant 0 : i32
    return %c0_i32, %arg0 : i32, i32
  }
}

</mosaic_0001>

<bundles_post_ra>
// kernel: pet_matching_forward.1
= control target key start
LH: loop header
LB: loop body
LE: loop exit
PB: predicated region body
PF: predicated region fallthrough
CT: control target
= control target key end

     0   :  { %vm118_vm0 = vcmask 1043456   ;;  %vm105_vm1 = vcmask 64512   ;;  %v518_v1 = vmov 0   ;;  %vm275_vm2 = vcmask 523264   ;;  %s654_s0 = inlined_call_operand.vmem [shape: f32[8,128], index: 0, kind: input, shape index: {}]   ;;  %s655_s1 = inlined_call_operand.vmem [shape: bf16[64,8], index: 1, kind: input, shape index: {}]   ;;  %s656_s2 = inlined_call_operand.vmem [shape: f32[64,1], index: 2, kind: input, shape index: {}]   ;;  %s657_s4 = inlined_call_operand.vmem [shape: f32[64,1], index: 4, kind: input, shape index: {}]   ;;  %s658_s6 = inlined_call_operand.vmem [shape: f32[8,1], index: 6, kind: input, shape index: {}]   ;;  %s659_s3 = inlined_call_operand.vmem [shape: bf16[64,64], index: 3, kind: input, shape index: {}]   ;;  %s660_s5 = inlined_call_operand.vmem [shape: bf16[8,64], index: 5, kind: input, shape index: {}]   ;;  %s661_s7 = inlined_call_operand.vmem [shape: f32[8,128], index: 7, kind: output, shape index: {}]  }
   0x1   :  { %v27_v0 = vld [vmem:[%s654_s0] sm:$0xff]  ;;  %504 = vset.pattern.permute.xlu0 %v518_v1  ;;  %505 = vset.pattern.permute.xlu1 %v518_v1  ;;  %v507_v5 = vld [vmem:[%s655_s1 + $0x8] sm:$0xff]   ;;  %v508_v6 = vld [vmem:[%s655_s1 + $0x10] sm:$0xff]   ;;  %v519_v1 = vmov 0.0   ;;  %vm520_vm3 = vmmov 0  }
   0x2   :  { %v28_v2 = vpack.c.bf16 %v27_v0, %v27_v0  ;;  %v506_v3 = vld [vmem:[%s655_s1] sm:$0xff]   ;;  %v39_v8 = vld [vmem:[%s656_s2 + $0x10] sm:$0xff]  ;;  %v38_v9 = vld [vmem:[%s656_s2 + $0x8] sm:$0xff] }
   0x3   :  { %464 = vmatprep.mubr.msk.bf16.mxu0 %vm105_vm1, %v506_v3  ;;  %v37_v7 = vld [vmem:[%s656_s2] sm:$0xff]  ;;  %57 = vperm.xlu1 %505, %v39_v8   ;;  %v40_v10 = vld [vmem:[%s656_s2 + $0x18] sm:$0xff]  ;;  %v42_v13 = vld [vmem:[%s656_s2 + $0x28] sm:$0xff] }
   0x4   :  { %500 = vmatprep.subr.msk.bf16.mxu0 %vm118_vm0, %v28_v2  ;;  %v120_v4 = vsel %vm118_vm0, %v28_v2, 0  ;;  %47 = vperm.xlu0 %504, %v37_v7   ;;  %v41_v11 = vld [vmem:[%s656_s2 + $0x20] sm:$0xff]  ;;  %v509_v12 = vld [vmem:[%s655_s1 + $0x18] sm:$0xff]   ;;  %v43_v14 = vld [vmem:[%s656_s2 + $0x30] sm:$0xff] }
   0x5   :  { %463 = vmatpush3.bf16.msra.mxu0 %v120_v4  ;;  %v44_v15 = vld [vmem:[%s656_s2 + $0x38] sm:$0xff]  ;;  %v207_v16 = vld [vmem:[%s657_s4] sm:$0xff]  ;;  %v208_v17 = vld [vmem:[%s657_s4 + $0x8] sm:$0xff] }
   0x6   :  { %v209_v18 = vld [vmem:[%s657_s4 + $0x10] sm:$0xff]  ;;  %v210_v19 = vld [vmem:[%s657_s4 + $0x18] sm:$0xff]  ;;  %v211_v20 = vld [vmem:[%s657_s4 + $0x20] sm:$0xff]  ;;  %488 = vmatprep.subr.bf16.mxu0 %v519_v1 }
   0x7   :  { %62 = vperm.xlu1 %505, %v40_v10   ;;  %v212_v21 = vld [vmem:[%s657_s4 + $0x28] sm:$0xff]  ;;  %v213_v22 = vld [vmem:[%s657_s4 + $0x30] sm:$0xff]  ;;  %v214_v23 = vld [vmem:[%s657_s4 + $0x38] sm:$0xff] }
   0x8   :  { %465 = vmatmul.mubr.msk.bf16.vlgmr.msra.gmra.mrb[0].mxu0 %vm105_vm1, %v507_v5  ;;  %52 = vperm.xlu0 %504, %v38_v9   ;;  %v366_v24 = vld [vmem:[%s658_s6] sm:$0xff]  ;;  %v511_v62 = vld [vmem:[%s659_s3 + $0x8] sm:$0xff]   ;;  %v512_v63 = vld [vmem:[%s659_s3 + $0x10] sm:$0xff]  }
   0x9   :  { %468 = vmatprep.mubr.msk.bf16.mxu0 %vm105_vm1, %v508_v6  ;;  %v510_v25 = vld [vmem:[%s659_s3] sm:$0xff]   ;;  %v513_v0 = vld [vmem:[%s659_s3 + $0x18] sm:$0xff]  }
   0xa   :  { %480 = vmatprep.mubr.msk.bf16.mxu1 %vm275_vm2, %v510_v25 }
   0xb   :  { %72 = vperm.xlu1 %505, %v42_v13  }
   0xc   :  { %67 = vperm.xlu0 %504, %v41_v11  }
   0xf   :  { %82 = vperm.xlu1 %505, %v44_v15  }
  0x10   :  { %469 = vmatmul.mubr.msk.bf16.gmra.mrb[4].mxu0 %vm105_vm1, %v509_v12  ;;  %77 = vperm.xlu0 %504, %v43_v14  }
  0x11   :  { %496 = vmatprep.mubr.msk.bf16.mxu0 %vm520_vm3, %v519_v1 }
  0x13   :  { %222 = vperm.xlu1 %505, %v208_v17  }
  0x14   :  { %217 = vperm.xlu0 %504, %v207_v16  }
  0x17   :  { %232 = vperm.xlu1 %505, %v210_v19  }
  0x18   :  { %227 = vperm.xlu0 %504, %v209_v18  }
  0x1b   :  { %242 = vperm.xlu1 %505, %v212_v21  }
  0x1c   :  { %237 = vperm.xlu0 %504, %v211_v20  }
  0x1f   :  { %252 = vperm.xlu1 %505, %v214_v23  }
  0x20   :  { %247 = vperm.xlu0 %504, %v213_v22  }
  0x24   :  { %369 = vperm.xlu0 %504, %v366_v24  }
  0x82   :  { %v58_v27 = vpop.permute.xlu1 %57 }
  0x83   :  { %v48_v26 = vpop.permute.xlu0 %47 }
  0x86   :  { %v63_v29 = vpop.permute.xlu1 %62 }
  0x87   :  { %v53_v28 = vpop.permute.xlu0 %52 }
  0x8a   :  { %v73_v38 = vpop.permute.xlu1 %72 }
  0x8b   :  { %v68_v33 = vpop.permute.xlu0 %67 }
  0x8e   :  { %v83_v50 = vpop.permute.xlu1 %82 }
  0x8f   :  { %v78_v45 = vpop.permute.xlu0 %77 }
  0x92   :  { %v223_v3 = vpop.permute.xlu1 %222 }
  0x93   :  { %v218_v2 = vpop.permute.xlu0 %217 }
  0x96   :  { %v233_v5 = vpop.permute.xlu1 %232 }
  0x97   :  { %v228_v4 = vpop.permute.xlu0 %227 }
  0x9a   :  { %v243_v14 = vpop.permute.xlu1 %242 }
  0x9b   :  { %v238_v9 = vpop.permute.xlu0 %237 }
  0x9f   :  { %v248_v21 = vpop.permute.xlu0 %247 }
  0xdb   :  { %v466_v30 = vpop.f32.mrb[0].mxu0 }
  0xdc   :  { %v165_v31 = vadd.f32 %v466_v30, %v58_v27  ;;  %v156_v32 = vpop.f32.mrb[1].mxu0 }
  0xdd   :  { %v157_v34 = vadd.f32 %v156_v32, %v48_v26  ;;  %v467_v35 = vpop.f32.mrb[2].mxu0  ;;  %v253_v26 = vpop.permute.xlu1 %252 }
  0xde   :  { %v168_v36 = vadd.f32 %v467_v35, %v63_v29  ;;  %v159_v37 = vpop.f32.mrb[3].mxu0  ;;  %v189_v40 = vmax.f32 %v165_v31, 0.0 }
  0xdf   :  { %v160_v39 = vadd.f32 %v159_v37, %v53_v28  ;;  %v187_v42 = vmax.f32 %v157_v34, 0.0 }
  0xe0   :  { %v190_v41 = vmax.f32 %v168_v36, 0.0 }
  0xe1   :  { %v188_v43 = vmax.f32 %v160_v39, 0.0  ;;  %v370_v39 = vpop.permute.xlu0 %369 }
  0xe2   :  { %v196_v44 = vpack.c.bf16 %v190_v41, %v189_v40 }
  0xe3   :  { %v470_v46 = vpop.f32.mrb[4].mxu0  ;;  %v195_v47 = vpack.c.bf16 %v188_v43, %v187_v42 }
  0xe4   :  { %v181_v48 = vadd.f32 %v470_v46, %v78_v45  ;;  %v172_v49 = vpop.f32.mrb[5].mxu0 }
  0xe5   :  { %v173_v51 = vadd.f32 %v172_v49, %v68_v33  ;;  %v471_v52 = vpop.f32.mrb[6].mxu0  ;;  %472 = vmatprep.subr.bf16.mxu1 %v195_v47 }
  0xe6   :  { %v184_v53 = vadd.f32 %v471_v52, %v83_v50  ;;  %v175_v54 = vpop.f32.mrb[7].mxu0  ;;  %473 = vmatpush3.bf16.msra.mxu1 %v195_v47  ;;  %v193_v56 = vmax.f32 %v181_v48, 0.0 }
  0xe7   :  { %v176_v55 = vadd.f32 %v175_v54, %v73_v38  ;;  %474 = vmatprep.subr.bf16.mxu1 %v196_v44  ;;  %v191_v58 = vmax.f32 %v173_v51, 0.0  ;;  %v365_v38 = vld [vmem:[%s660_s5] sm:$0xf] }
  0xe8   :  { %v194_v57 = vmax.f32 %v184_v53, 0.0 }
  0xe9   :  { %v192_v59 = vmax.f32 %v176_v55, 0.0 }
  0xea   :  { %v198_v60 = vpack.c.bf16 %v194_v57, %v193_v56  ;;  %475 = vmatpush3.bf16.msra.mxu1 %v196_v44 }
  0xeb   :  { %v197_v61 = vpack.c.bf16 %v192_v59, %v191_v58 }
  0xed   :  { %476 = vmatprep.subr.bf16.mxu1 %v197_v61 }
  0xee   :  { %477 = vmatpush3.bf16.msra.mxu1 %v197_v61 }
  0xef   :  { %478 = vmatprep.subr.bf16.mxu1 %v198_v60 }
  0xf2   :  { %479 = vmatpush3.bf16.msra.mxu1 %v198_v60 }
  0xf5   :  { %481 = vmatmul.mubr.msk.bf16.vlgmr.msra.gmra.mrb[0].mxu1 %vm275_vm2, %v511_v62 }
  0xf6   :  { %484 = vmatprep.mubr.msk.bf16.mxu1 %vm275_vm2, %v512_v63 }
  0xfd   :  { %485 = vmatmul.mubr.msk.bf16.gmra.mrb[4].mxu1 %vm275_vm2, %v513_v0 }
 0x1c8   :  { %v482_v6 = vpop.f32.mrb[0].mxu1 }
 0x1c9   :  { %v331_v7 = vadd.f32 %v482_v6, %v228_v4  ;;  %v322_v8 = vpop.f32.mrb[1].mxu1 }
 0x1ca   :  { %v323_v10 = vadd.f32 %v322_v8, %v218_v2  ;;  %v483_v11 = vpop.f32.mrb[2].mxu1 }
 0x1cb   :  { %v334_v12 = vadd.f32 %v483_v11, %v233_v5  ;;  %v325_v13 = vpop.f32.mrb[3].mxu1  ;;  %v355_v16 = vmax.f32 %v331_v7, 0.0 }
 0x1cc   :  { %v326_v15 = vadd.f32 %v325_v13, %v223_v3  ;;  %v353_v18 = vmax.f32 %v323_v10, 0.0 }
 0x1cd   :  { %v356_v17 = vmax.f32 %v334_v12, 0.0 }
 0x1ce   :  { %v354_v19 = vmax.f32 %v326_v15, 0.0 }
 0x1cf   :  { %v362_v20 = vpack.c.bf16 %v356_v17, %v355_v16 }
 0x1d0   :  { %v361_v22 = vpack.c.bf16 %v354_v19, %v353_v18  ;;  %v486_v23 = vpop.f32.mrb[4].mxu1 }
 0x1d1   :  { %v347_v24 = vadd.f32 %v486_v23, %v248_v21  ;;  %v338_v25 = vpop.f32.mrb[5].mxu1 }
 0x1d2   :  { %v339_v27 = vadd.f32 %v338_v25, %v238_v9  ;;  %v487_v28 = vpop.f32.mrb[6].mxu1  ;;  %489 = vmatpush3.bf16.msra.mxu0 %v361_v22 }
 0x1d3   :  { %v350_v29 = vadd.f32 %v487_v28, %v253_v26  ;;  %v341_v30 = vpop.f32.mrb[7].mxu1  ;;  %490 = vmatprep.subr.bf16.mxu0 %v519_v1  ;;  %v359_v32 = vmax.f32 %v347_v24, 0.0 }
 0x1d4   :  { %v342_v31 = vadd.f32 %v341_v30, %v243_v14  ;;  %v357_v34 = vmax.f32 %v339_v27, 0.0 }
 0x1d5   :  { %v360_v33 = vmax.f32 %v350_v29, 0.0 }
 0x1d6   :  { %v358_v35 = vmax.f32 %v342_v31, 0.0  ;;  %491 = vmatpush3.bf16.msra.mxu0 %v362_v20 }
 0x1d7   :  { %v364_v36 = vpack.c.bf16 %v360_v33, %v359_v32  ;;  %492 = vmatprep.subr.bf16.mxu0 %v519_v1 }
 0x1d8   :  { %v363_v37 = vpack.c.bf16 %v358_v35, %v357_v34 }
 0x1da   :  { %493 = vmatpush3.bf16.msra.mxu0 %v363_v37 }
 0x1db   :  { %494 = vmatprep.subr.bf16.mxu0 %v519_v1 }
 0x1de   :  { %495 = vmatpush3.bf16.msra.mxu0 %v364_v36 }
 0x1e1   :  { %497 = vmatmul.mubr.msk.bf16.vlgmr.msra.gmra.mrb[8].mxu0 %vm275_vm2, %v365_v38 }
 0x2b4   :  { %v409_v40 = vpop.f32.mrb[8].mxu0 }
 0x2b5   :  { %v410_v41 = vadd.f32 %v409_v40, %v370_v39  ;;  %v498_v42 = vpop.f32.mrb[9].mxu0 }
 0x2b6   :  { %v412_v43 = vpop.f32.mrb[10].mxu0 }
 0x2b7   :  { %v443_v44 = vmul.f32 -1.442695, %v410_v41  ;;  %v499_v45 = vpop.f32.mrb[11].mxu0 }
 0x2b9   :  { %514 = vpow2.f32 %v443_v44 }
 0x2c3   :  { %v515_v46 = vpop.eup %514 }
 0x2c4   :  { %v418_v47 = vadd.f32 1.0, %v515_v46 }
 0x2c6   :  { %516 = vrcp.f32 %v418_v47 }
 0x2d0   :  { %v517_v48 = vpop.eup %516 }
 0x2d1   :  { %421 = vst [vmem:[%s661_s7] sm:$0xff] %v517_v48 }

</bundles_post_ra>
